<compile_context>
chip_gen: v7x
topology: tpu7x:2x2x1
jax: 0.10.0
libtpu: 0.0.40
codegen_flags: <defaults>
</compile_context>

<pallas_src>
import jax
import jax.numpy as jnp
from jax.experimental import pallas as pl
from jax.experimental.pallas import tpu as pltpu


# ---------------------------------------------------------------------------
# Kernels
# ---------------------------------------------------------------------------

def se_matmul_kernel(x_ref, pool_ref, w1_ref, b1_ref, w2_ref, b2_ref,
                     bcast_ref, o_ref):
    # x_ref:     (bn, CLp)  in I/O dtype (f32 or bf16), lane-dense
    # pool_ref:  (CLp, C)   pool[c*L + l, c] = 1/L  (mean over L as a matmul)
    # w1_ref:    (C, Cr) f32 ; b1_ref: (1, Cr) f32
    # w2_ref:    (Cr, C) f32 ; b2_ref: (1, C)  f32
    # bcast_ref: (C, CLp)   bcast[c, c*L + l] = 1  (gate broadcast as a matmul)
    # o_ref:     (bn, CLp)  in I/O dtype
    x = x_ref[...]

    # Squeeze: global average pool over L on the MXU (frees the XLU).  x is fed
    # in its native dtype; accumulation is f32.
    s = jnp.dot(x, pool_ref[...], preferred_element_type=jnp.float32)        # (bn, C)

    # Excitation: two 1x1 "convs" == tiny f32 matmuls with M = bn.
    h = jnp.dot(s, w1_ref[...], preferred_element_type=jnp.float32) + b1_ref[...]
    h = jnp.maximum(h, 0.0)                                                  # (bn, Cr)
    z = jnp.dot(h, w2_ref[...], preferred_element_type=jnp.float32) + b2_ref[...]
    z = jax.nn.sigmoid(z)                                                    # (bn, C)

    # Scale: broadcast the per-channel gate over L via a matmul so the multiply
    # and store stay lane-dense.  z is cast to the constant dtype (bf16 only
    # when the I/O is bf16).
    scale = jnp.dot(z.astype(bcast_ref.dtype), bcast_ref[...],
                    preferred_element_type=jnp.float32)                      # (bn, CLp)

    # Multiply in the I/O dtype: for bf16 I/O this avoids a full-tile f32 copy
    # of x; for f32 I/O the astype is a no-op and the multiply is exact f32.
    o_ref[...] = (x * scale.astype(x.dtype)).astype(o_ref.dtype)


def se_direct_kernel(x_ref, w1_ref, b1_ref, w2_ref, b2_ref, o_ref):
    # Fallback for large C*L (constant matrices would blow VMEM / flip the op
    # MXU-bound): natural (bn, C, L) layout, XLU reduction over L.
    x = x_ref[...]                                                           # (bn, C, L)
    s = jnp.mean(x.astype(jnp.float32), axis=-1)                             # (bn, C)
    h = jnp.dot(s, w1_ref[...], preferred_element_type=jnp.float32) + b1_ref[...]
    h = jnp.maximum(h, 0.0)
    z = jnp.dot(h, w2_ref[...], preferred_element_type=jnp.float32) + b2_ref[...]
    z = jax.nn.sigmoid(z)                                                    # (bn, C)
    o_ref[...] = (x * z.astype(x.dtype)[:, :, None]).astype(o_ref.dtype)


# ---------------------------------------------------------------------------
# Wrapper
# ---------------------------------------------------------------------------

def _round_up(a, b):
    return -(-a // b) * b


def _pick_vmem_limit_bytes():
    """~3/4 of physical per-core VMEM (48 MiB on v7x, 96 MiB on v5e/v6e),
    capped at 100 MiB; falls back to 48 MiB if the query is unavailable."""
    try:
        cap = int(pltpu.get_tpu_info().vmem_capacity_bytes)
    except Exception:
        cap = 64 * 1024 * 1024
    return min(cap * 3 // 4, 100 * 1024 * 1024)


def _pick_batch_tile(N, row_bytes, io_bytes, x_tile_budget_bytes):
    """Rows per grid step: sublane-aligned (8 f32 / 16 bf16), targets the MXU M
    dimension (256), stays under the per-buffer VMEM budget, and prefers >= 2
    grid steps so the 'parallel' axis can shard across v7x's two TensorCores.
    N no longer needs to divide evenly: rows are zero-padded up to g*bn."""
    sublane = 16 if io_bytes == 2 else 8
    target = 256
    cap = max(sublane, (x_tile_budget_bytes // max(1, row_bytes)) // sublane * sublane)
    bn = min(target, _round_up(N, sublane), cap)
    bn = max(sublane, bn - bn % sublane)
    g = -(-N // bn)
    if g == 1 and bn > sublane and N > sublane:
        g = 2
    bn = max(sublane, min(bn, _round_up(-(-N // g), sublane)))
    g = -(-N // bn)
    return bn, g


def se_module(x, w1, b1, w2, b2, *, max_const_bytes=4 * 1024 * 1024):
    """SEModule forward. x: (N, C, L); w1: (Cr, C); b1: (Cr,); w2: (C, Cr); b2: (C,)."""
    N, C, L = x.shape
    Cr = w1.shape[0]
    CL = C * L
    io_dtype = x.dtype
    io_bytes = jnp.dtype(io_dtype).itemsize

    # bf16 MXU operands when the I/O is 16-bit (pool/bcast entries are 0, 1,
    # 1/L, so the pooling matmul stays exact); f32 operands for f32 I/O.
    const_dtype = jnp.bfloat16 if io_bytes == 2 else jnp.float32
    const_bytes = jnp.dtype(const_dtype).itemsize

    vmem_limit = _pick_vmem_limit_bytes()
    x_tile_budget = vmem_limit // 8   # per-buffer x tile (in + out double-buffered)

    # Conv1d(k=1) weights pre-transposed for row-major matmuls; kept f32 (these
    # matmuls are tiny, precision matters more than MXU passes here).
    w1_t = jnp.asarray(w1, jnp.float32).T               # (C, Cr)
    w2_t = jnp.asarray(w2, jnp.float32).T               # (Cr, C)
    b1_2d = jnp.asarray(b1, jnp.float32).reshape(1, Cr)
    b2_2d = jnp.asarray(b2, jnp.float32).reshape(1, C)

    use_matmul_path = (C * CL * const_bytes) <= max_const_bytes

    if use_matmul_path:
        # Lane-dense layout: trailing axis is C*L, padded to a multiple of 128
        # so output stores are unmasked full-width vst.
        CLp = _round_up(CL, 128)
        bn, g = _pick_batch_tile(N, CLp * io_bytes, io_bytes, x_tile_budget)
        Np = g * bn

        x2d = jnp.pad(x.reshape(N, CL), ((0, Np - N), (0, CLp - CL)))

        # Constant pooling / gate-broadcast matrices (padded columns are zero,
        # so padding never perturbs the mean or the output).
        bcast = jnp.repeat(jnp.eye(C, dtype=jnp.float32), L, axis=1)          # (C, CL)
        pool = bcast.T / jnp.float32(L)                                       # (CL, C)
        bcast = jnp.pad(bcast, ((0, 0), (0, CLp - CL))).astype(const_dtype)   # (C, CLp)
        pool = jnp.pad(pool, ((0, CLp - CL), (0, 0))).astype(const_dtype)     # (CLp, C)

        cost = pl.CostEstimate(
            flops=2 * Np * CLp * C + 4 * Np * C * Cr + 2 * Np * C * CLp + Np * CLp,
            transcendentals=Np * C,
            bytes_accessed=2 * Np * CLp * io_bytes
            + 2 * C * CLp * const_bytes + (2 * C * Cr + C + Cr) * 4,
        )

        # Note: pool/bcast/weights are grid-invariant; default double-buffering
        # duplicates their (small at these sizes) VMEM footprint.  Revisit with
        # single-buffering if they ever grow close to the budget.
        out2d = pl.pallas_call(
            se_matmul_kernel,
            out_shape=jax.ShapeDtypeStruct((Np, CLp), io_dtype),
            grid_spec=pltpu.PrefetchScalarGridSpec(
                num_scalar_prefetch=0,
                grid=(g,),
                in_specs=[
                    pl.BlockSpec((bn, CLp), lambda n: (n, 0)),   # x rows, lane-dense
                    pl.BlockSpec((CLp, C), lambda n: (0, 0)),    # pooling matrix
                    pl.BlockSpec((C, Cr), lambda n: (0, 0)),     # w1^T
                    pl.BlockSpec((1, Cr), lambda n: (0, 0)),     # b1
                    pl.BlockSpec((Cr, C), lambda n: (0, 0)),     # w2^T
                    pl.BlockSpec((1, C), lambda n: (0, 0)),      # b2
                    pl.BlockSpec((C, CLp), lambda n: (0, 0)),    # broadcast matrix
                ],
                out_specs=pl.BlockSpec((bn, CLp), lambda n: (n, 0)),
            ),
            compiler_params=pltpu.CompilerParams(
                dimension_semantics=("parallel",),
                vmem_limit_bytes=vmem_limit,
            ),
            cost_estimate=cost,
        )(x2d, pool, w1_t, b1_2d, w2_t, b2_2d, bcast)

        return out2d[:N, :CL].reshape(N, C, L)

    # ----- Fallback for large C*L: no O(C^2*L) constants, reduce over L on-chip.
    # TODO(synk): for extreme C*L where even a single (sublane, C, L) block
    # exceeds the per-buffer budget, this should become a two-axis grid with a
    # tiled L reduction (pl.when init/finalize) plus a second lane-dense scale pass.
    bn, g = _pick_batch_tile(N, CL * io_bytes, io_bytes, x_tile_budget)
    Np = g * bn
    x3 = jnp.pad(x, ((0, Np - N), (0, 0), (0, 0)))

    cost = pl.CostEstimate(
        flops=2 * Np * CL + 4 * Np * C * Cr,
        transcendentals=Np * C,
        bytes_accessed=2 * Np * CL * io_bytes + (2 * C * Cr + C + Cr) * 4,
    )

    out3 = pl.pallas_call(
        se_direct_kernel,
        out_shape=jax.ShapeDtypeStruct((Np, C, L), io_dtype),
        grid_spec=pltpu.PrefetchScalarGridSpec(
            num_scalar_prefetch=0,
            grid=(g,),
            in_specs=[
                pl.BlockSpec((bn, C, L), lambda n: (n, 0, 0)),
                pl.BlockSpec((C, Cr), lambda n: (0, 0)),
                pl.BlockSpec((1, Cr), lambda n: (0, 0)),
                pl.BlockSpec((Cr, C), lambda n: (0, 0)),
                pl.BlockSpec((1, C), lambda n: (0, 0)),
            ],
            out_specs=pl.BlockSpec((bn, C, L), lambda n: (n, 0, 0)),
        ),
        compiler_params=pltpu.CompilerParams(
            dimension_semantics=("parallel",),
            vmem_limit_bytes=vmem_limit,
        ),
        cost_estimate=cost,
    )(x3, w1_t, b1_2d, w2_t, b2_2d)

    return out3[:N]


def se_reference(x, w1, b1, w2, b2):
    """Pure-JAX reference mirroring the PyTorch forward."""
    xf = x.astype(jnp.float32)
    s = jnp.mean(xf, axis=-1, keepdims=True)                       # (N, C, 1)
    h = jnp.einsum('oc,ncl->nol', w1, s) + b1[None, :, None]       # (N, Cr, 1)
    h = jnp.maximum(h, 0.0)
    z = jnp.einsum('oc,ncl->nol', w2, h) + b2[None, :, None]       # (N, C, 1)
    z = jax.nn.sigmoid(z)
    return (xf * z).astype(x.dtype)


if __name__ == "__main__":
    # channels must be > reduction (=16) per the module assert.
    N, C, L = 2, 32, 16
    reduction = 16
    Cr = C // reduction

    key = jax.random.PRNGKey(0)
    kx, k1, k2, k3, k4 = jax.random.split(key, 5)
    x = jax.random.normal(kx, (N, C, L), dtype=jnp.float32)
    # Deterministic synthetic params (Conv1d k=1 weights squeezed to 2D).
    w1 = jax.random.normal(k1, (Cr, C), dtype=jnp.float32) * 0.1
    b1 = jax.random.normal(k2, (Cr,), dtype=jnp.float32) * 0.1
    w2 = jax.random.normal(k3, (C, Cr), dtype=jnp.float32) * 0.1
    b2 = jax.random.normal(k4, (C,), dtype=jnp.float32) * 0.1

    # Jitting the wrapper hoists/caches the constant & weight preprocessing.
    se_jit = jax.jit(se_module)

    # 1) f32 I/O, MXU pooling/broadcast path.
    out = jax.block_until_ready(se_jit(x, w1, b1, w2, b2))
    ref = se_reference(x, w1, b1, w2, b2)
    assert out.shape == (N, C, L) and out.dtype == x.dtype
    assert jnp.allclose(out, ref, atol=1e-5, rtol=1e-5), "f32 matmul-path mismatch"

    # 2) bf16 I/O -> bf16 MXU operands (looser tolerance: bf16 gate + multiply).
    xb = x.astype(jnp.bfloat16)
    outb = jax.block_until_ready(se_jit(xb, w1, b1, w2, b2))
    refb = se_reference(xb, w1, b1, w2, b2)
    assert outb.shape == (N, C, L) and outb.dtype == jnp.bfloat16
    assert jnp.allclose(outb.astype(jnp.float32), refb.astype(jnp.float32),
                        atol=5e-2, rtol=5e-2), "bf16 matmul-path mismatch"

    # 3) Direct (large-C*L fallback) path, forced at the toy size.
    out_d = jax.block_until_ready(se_module(x, w1, b1, w2, b2, max_const_bytes=0))
    assert out_d.shape == (N, C, L) and out_d.dtype == x.dtype
    assert jnp.allclose(out_d, ref, atol=1e-5, rtol=1e-5), "direct-path mismatch"

    print("KERNEL_OK")
</pallas_src>

<mosaic_0001>
module attributes {stable_mosaic.version = 11 : i64} {
  func.func @se_matmul_kernel(%arg0: i32, %arg1: memref<8x512xf32, #tpu.memory_space<vmem>>, %arg2: memref<512x32xf32, #tpu.memory_space<vmem>>, %arg3: memref<32x2xf32, #tpu.memory_space<vmem>>, %arg4: memref<1x2xf32, #tpu.memory_space<vmem>>, %arg5: memref<2x32xf32, #tpu.memory_space<vmem>>, %arg6: memref<1x32xf32, #tpu.memory_space<vmem>>, %arg7: memref<32x512xf32, #tpu.memory_space<vmem>>, %arg8: memref<8x512xf32, #tpu.memory_space<vmem>>) attributes {dimension_semantics = [#tpu.dimension_semantics<parallel>], iteration_bounds = array<i64: 1>, scalar_prefetch = 0 : i64, scratch_operands = 0 : i64, tpu.core_type = #tpu.core_type<tc>, window_params = [{transform_indices = @transform_0, window_bounds = array<i64: 8, 512>}, {pipeline_mode = #tpu.pipeline_mode<synchronous>, transform_indices = @transform_1, window_bounds = array<i64: 512, 32>}, {pipeline_mode = #tpu.pipeline_mode<synchronous>, transform_indices = @transform_2, window_bounds = array<i64: 32, 2>}, {pipeline_mode = #tpu.pipeline_mode<synchronous>, transform_indices = @transform_3, window_bounds = array<i64: 1, 2>}, {pipeline_mode = #tpu.pipeline_mode<synchronous>, transform_indices = @transform_4, window_bounds = array<i64: 2, 32>}, {pipeline_mode = #tpu.pipeline_mode<synchronous>, transform_indices = @transform_5, window_bounds = array<i64: 1, 32>}, {pipeline_mode = #tpu.pipeline_mode<synchronous>, transform_indices = @transform_6, window_bounds = array<i64: 32, 512>}, {transform_indices = @transform_7, window_bounds = array<i64: 8, 512>}]} {
    %c0 = arith.constant 0 : index
    %c0_0 = arith.constant 0 : index
    %0 = vector.load %arg1[%c0, %c0_0] : memref<8x512xf32, #tpu.memory_space<vmem>>, vector<8x512xf32>
    %c0_1 = arith.constant 0 : index
    %c0_2 = arith.constant 0 : index
    %1 = vector.load %arg2[%c0_1, %c0_2] : memref<512x32xf32, #tpu.memory_space<vmem>>, vector<512x32xf32>
    %cst = arith.constant dense<0.000000e+00> : vector<8x32xf32>
    %2 = tpu.matmul %0, %1, %cst {dimension_numbers = #tpu.dot_dimension_numbers<[1], [0], [0], [1], [0, 0, 1, 1], [], []>} : vector<8x512xf32>, vector<512x32xf32>, vector<8x32xf32> -> vector<8x32xf32>
    %c0_3 = arith.constant 0 : index
    %c0_4 = arith.constant 0 : index
    %3 = vector.load %arg3[%c0_3, %c0_4] : memref<32x2xf32, #tpu.memory_space<vmem>>, vector<32x2xf32>
    %cst_5 = arith.constant dense<0.000000e+00> : vector<8x2xf32>
    %4 = tpu.matmul %2, %3, %cst_5 {dimension_numbers = #tpu.dot_dimension_numbers<[1], [0], [0], [1], [0, 0, 1, 1], [], []>} : vector<8x32xf32>, vector<32x2xf32>, vector<8x2xf32> -> vector<8x2xf32>
    %c0_6 = arith.constant 0 : index
    %c0_7 = arith.constant 0 : index
    %5 = vector.load %arg4[%c0_6, %c0_7] : memref<1x2xf32, #tpu.memory_space<vmem>>, vector<1x2xf32>
    %6 = vector.broadcast %5 : vector<1x2xf32> to vector<8x2xf32>
    %7 = arith.addf %4, %6 : vector<8x2xf32>
    %cst_8 = arith.constant 0.000000e+00 : f32
    %8 = vector.broadcast %cst_8 : f32 to vector<8x2xf32>
    %9 = arith.maximumf %7, %8 : vector<8x2xf32>
    %c0_9 = arith.constant 0 : index
    %c0_10 = arith.constant 0 : index
    %10 = vector.load %arg5[%c0_9, %c0_10] : memref<2x32xf32, #tpu.memory_space<vmem>>, vector<2x32xf32>
    %cst_11 = arith.constant dense<0.000000e+00> : vector<8x32xf32>
    %11 = tpu.matmul %9, %10, %cst_11 {dimension_numbers = #tpu.dot_dimension_numbers<[1], [0], [0], [1], [0, 0, 1, 1], [], []>} : vector<8x2xf32>, vector<2x32xf32>, vector<8x32xf32> -> vector<8x32xf32>
    %c0_12 = arith.constant 0 : index
    %c0_13 = arith.constant 0 : index
    %12 = vector.load %arg6[%c0_12, %c0_13] : memref<1x32xf32, #tpu.memory_space<vmem>>, vector<1x32xf32>
    %13 = vector.broadcast %12 : vector<1x32xf32> to vector<8x32xf32>
    %14 = arith.addf %11, %13 : vector<8x32xf32>
    %15 = arith.negf %14 : vector<8x32xf32>
    %16 = math.exp %15 : vector<8x32xf32>
    %cst_14 = arith.constant 1.000000e+00 : f32
    %17 = vector.broadcast %cst_14 : f32 to vector<8x32xf32>
    %18 = arith.addf %17, %16 : vector<8x32xf32>
    %19 = arith.divf %17, %18 : vector<8x32xf32>
    %c0_15 = arith.constant 0 : index
    %c0_16 = arith.constant 0 : index
    %20 = vector.load %arg7[%c0_15, %c0_16] : memref<32x512xf32, #tpu.memory_space<vmem>>, vector<32x512xf32>
    %cst_17 = arith.constant dense<0.000000e+00> : vector<8x512xf32>
    %21 = tpu.matmul %19, %20, %cst_17 {dimension_numbers = #tpu.dot_dimension_numbers<[1], [0], [0], [1], [0, 0, 1, 1], [], []>} : vector<8x32xf32>, vector<32x512xf32>, vector<8x512xf32> -> vector<8x512xf32>
    %22 = arith.mulf %0, %21 : vector<8x512xf32>
    %c0_18 = arith.constant 0 : index
    %c0_19 = arith.constant 0 : index
    %23 = vector.load %arg8[%c0_18, %c0_19] : memref<8x512xf32, #tpu.memory_space<vmem>>, vector<8x512xf32>
    tpu.vector_store %arg8[%c0_18, %c0_19], %22 {strides = array<i32>} : memref<8x512xf32, #tpu.memory_space<vmem>>, vector<8x512xf32>,
    return
  }
  func.func @transform_0(%arg0: i32) -> (i32, i32) {
    %c0_i32 = arith.constant 0 : i32
    %c0_i32_0 = arith.constant 0 : i32
    return %arg0, %c0_i32 : i32, i32
  }
  func.func @transform_1(%arg0: i32) -> (i32, i32) {
    %c0_i32 = arith.constant 0 : i32
    %c0_i32_0 = arith.constant 0 : i32
    %c0_i32_1 = arith.constant 0 : i32
    return %c0_i32, %c0_i32_0 : i32, i32
  }
  func.func @transform_2(%arg0: i32) -> (i32, i32) {
    %c0_i32 = arith.constant 0 : i32
    %c0_i32_0 = arith.constant 0 : i32
    %c0_i32_1 = arith.constant 0 : i32
    return %c0_i32, %c0_i32_0 : i32, i32
  }
  func.func @transform_3(%arg0: i32) -> (i32, i32) {
    %c0_i32 = arith.constant 0 : i32
    %c0_i32_0 = arith.constant 0 : i32
    %c0_i32_1 = arith.constant 0 : i32
    return %c0_i32, %c0_i32_0 : i32, i32
  }
  func.func @transform_4(%arg0: i32) -> (i32, i32) {
    %c0_i32 = arith.constant 0 : i32
    %c0_i32_0 = arith.constant 0 : i32
    %c0_i32_1 = arith.constant 0 : i32
    return %c0_i32, %c0_i32_0 : i32, i32
  }
  func.func @transform_5(%arg0: i32) -> (i32, i32) {
    %c0_i32 = arith.constant 0 : i32
    %c0_i32_0 = arith.constant 0 : i32
    %c0_i32_1 = arith.constant 0 : i32
    return %c0_i32, %c0_i32_0 : i32, i32
  }
  func.func @transform_6(%arg0: i32) -> (i32, i32) {
    %c0_i32 = arith.constant 0 : i32
    %c0_i32_0 = arith.constant 0 : i32
    %c0_i32_1 = arith.constant 0 : i32
    return %c0_i32, %c0_i32_0 : i32, i32
  }
  func.func @transform_7(%arg0: i32) -> (i32, i32) {
    %c0_i32 = arith.constant 0 : i32
    %c0_i32_0 = arith.constant 0 : i32
    return %arg0, %c0_i32 : i32, i32
  }
}

</mosaic_0001>

<bundles_post_ra>
// kernel: se_module.1
= control target key start
LH: loop header
LB: loop body
LE: loop exit
PB: predicated region body
PF: predicated region fallthrough
CT: control target
= control target key end

     0   :  { %vm780_vm0 = vmmov 0   ;;  %vm245_vm1 = vcmask 261120   ;;  %vm332_vm2 = vcmask 1041408   ;;  %vm328_vm3 = vcmask 15360   ;;  %s1126_s1 = inlined_call_operand.vmem [shape: f32[512,32], index: 1, kind: input, shape index: {}]   ;;  %s1127_s0 = inlined_call_operand.vmem [shape: f32[8,512], index: 0, kind: input, shape index: {}]   ;;  %s1128_s2 = inlined_call_operand.vmem [shape: f32[32,2], index: 2, kind: input, shape index: {}]   ;;  %s1129_s4 = inlined_call_operand.vmem [shape: f32[2,32], index: 4, kind: input, shape index: {}]   ;;  %s1130_s3 = inlined_call_operand.vmem [shape: f32[1,2], index: 3, kind: input, shape index: {}]   ;;  %s1131_s6 = inlined_call_operand.vmem [shape: f32[32,512], index: 6, kind: input, shape index: {}]   ;;  %s1132_s5 = inlined_call_operand.vmem [shape: f32[1,32], index: 5, kind: input, shape index: {}]   ;;  %s1133_s7 = inlined_call_operand.vmem [shape: f32[8,512], index: 7, kind: output, shape index: {}]  }
   0x1   :  { %v46_v0 = vld [vmem:[%s1126_s1 + $0x80] sm:$0xff]  ;;  %v47_v1 = vld [vmem:[%s1126_s1 + $0x88] sm:$0xff]  ;;  %v48_v11 = vld [vmem:[%s1126_s1 + $0x90] sm:$0xff] }
   0x2   :  { %v78_v2 = vld [vmem:[%s1126_s1 + $0x180] sm:$0xff]  ;;  %v686_v3 = vpack.c.bf16 %v47_v1, %v46_v0  ;;  %v79_v4 = vld [vmem:[%s1126_s1 + $0x188] sm:$0xff]  ;;  %v49_v13 = vld [vmem:[%s1126_s1 + $0x98] sm:$0xff] }
   0x3   :  { %v30_v5 = vld [vmem:[%s1126_s1] sm:$0xff]  ;;  %v31_v6 = vld [vmem:[%s1126_s1 + $0x8] sm:$0xff]  ;;  %v718_v7 = vpack.c.bf16 %v79_v4, %v78_v2  ;;  %v80_v14 = vld [vmem:[%s1126_s1 + $0x190] sm:$0xff]  ;;  %v690_v16 = vpack.c.bf16 %v49_v13, %v48_v11 }
   0x4   :  { %v688_v8 = vpack.c.bf16 %v31_v6, %v30_v5  ;;  %v62_v9 = vld [vmem:[%s1126_s1 + $0x100] sm:$0xff]  ;;  %v63_v10 = vld [vmem:[%s1126_s1 + $0x108] sm:$0xff]  ;;  %687 = vmatprep.subr.bf16.mxu0 %v686_v3  ;;  %v81_v15 = vld [vmem:[%s1126_s1 + $0x198] sm:$0xff] }
   0x5   :  { %v720_v12 = vpack.c.bf16 %v63_v10, %v62_v9  ;;  %719 = vmatprep.subr.bf16.mxu1 %v718_v7  ;;  %v722_v17 = vpack.c.bf16 %v81_v15, %v80_v14  ;;  %v32_v18 = vld [vmem:[%s1126_s1 + $0x10] sm:$0xff]  ;;  %v33_v19 = vld [vmem:[%s1126_s1 + $0x18] sm:$0xff]  ;;  %v50_v23 = vld [vmem:[%s1126_s1 + $0xa0] sm:$0xff] }
   0x6   :  { %689 = vmatpush3.bf16.msra.mxu0 %v688_v8  ;;  %v64_v20 = vld [vmem:[%s1126_s1 + $0x110] sm:$0xff]  ;;  %v692_v21 = vpack.c.bf16 %v33_v19, %v32_v18  ;;  %v65_v22 = vld [vmem:[%s1126_s1 + $0x118] sm:$0xff]  ;;  %v51_v24 = vld [vmem:[%s1126_s1 + $0xa8] sm:$0xff] }
   0x7   :  { %721 = vmatpush3.bf16.msra.mxu1 %v720_v12  ;;  %691 = vmatprep.subr.bf16.mxu0 %v690_v16  ;;  %v724_v25 = vpack.c.bf16 %v65_v22, %v64_v20  ;;  %v694_v26 = vpack.c.bf16 %v51_v24, %v50_v23  ;;  %v82_v27 = vld [vmem:[%s1126_s1 + $0x1a0] sm:$0xff]  ;;  %v83_v28 = vld [vmem:[%s1126_s1 + $0x1a8] sm:$0xff]  ;;  %v52_v35 = vld [vmem:[%s1126_s1 + $0xb0] sm:$0xff] }
   0x8   :  { %723 = vmatprep.subr.bf16.mxu1 %v722_v17  ;;  %v34_v29 = vld [vmem:[%s1126_s1 + $0x20] sm:$0xff]  ;;  %v726_v30 = vpack.c.bf16 %v83_v28, %v82_v27  ;;  %v35_v31 = vld [vmem:[%s1126_s1 + $0x28] sm:$0xff]  ;;  %v53_v36 = vld [vmem:[%s1126_s1 + $0xb8] sm:$0xff] }
   0x9   :  { %v66_v32 = vld [vmem:[%s1126_s1 + $0x120] sm:$0xff]  ;;  %v67_v33 = vld [vmem:[%s1126_s1 + $0x128] sm:$0xff]  ;;  %v696_v34 = vpack.c.bf16 %v35_v31, %v34_v29  ;;  %v84_v37 = vld [vmem:[%s1126_s1 + $0x1b0] sm:$0xff]  ;;  %v698_v39 = vpack.c.bf16 %v53_v36, %v52_v35 }
   0xa   :  { %693 = vmatpush3.bf16.msra.mxu0 %v692_v21  ;;  %v728_v38 = vpack.c.bf16 %v67_v33, %v66_v32  ;;  %v85_v40 = vld [vmem:[%s1126_s1 + $0x1b8] sm:$0xff]  ;;  %v36_v41 = vld [vmem:[%s1126_s1 + $0x30] sm:$0xff]  ;;  %v54_v46 = vld [vmem:[%s1126_s1 + $0xc0] sm:$0xff] }
   0xb   :  { %725 = vmatpush3.bf16.msra.mxu1 %v724_v25  ;;  %695 = vmatprep.subr.bf16.mxu0 %v694_v26  ;;  %v37_v42 = vld [vmem:[%s1126_s1 + $0x38] sm:$0xff]  ;;  %v730_v43 = vpack.c.bf16 %v85_v40, %v84_v37  ;;  %v68_v44 = vld [vmem:[%s1126_s1 + $0x130] sm:$0xff]  ;;  %v55_v47 = vld [vmem:[%s1126_s1 + $0xc8] sm:$0xff] }
   0xc   :  { %727 = vmatprep.subr.bf16.mxu1 %v726_v30  ;;  %v69_v45 = vld [vmem:[%s1126_s1 + $0x138] sm:$0xff]  ;;  %v86_v48 = vld [vmem:[%s1126_s1 + $0x1c0] sm:$0xff]  ;;  %v87_v49 = vld [vmem:[%s1126_s1 + $0x1c8] sm:$0xff]  ;;  %v700_v50 = vpack.c.bf16 %v37_v42, %v36_v41  ;;  %v702_v52 = vpack.c.bf16 %v55_v47, %v54_v46 }
   0xd   :  { %v732_v51 = vpack.c.bf16 %v69_v45, %v68_v44  ;;  %v38_v53 = vld [vmem:[%s1126_s1 + $0x40] sm:$0xff]  ;;  %v39_v54 = vld [vmem:[%s1126_s1 + $0x48] sm:$0xff]  ;;  %v734_v56 = vpack.c.bf16 %v87_v49, %v86_v48  ;;  %v56_v58 = vld [vmem:[%s1126_s1 + $0xd0] sm:$0xff] }
   0xe   :  { %697 = vmatpush3.bf16.msra.mxu0 %v696_v34  ;;  %v70_v55 = vld [vmem:[%s1126_s1 + $0x140] sm:$0xff]  ;;  %v71_v57 = vld [vmem:[%s1126_s1 + $0x148] sm:$0xff]  ;;  %v57_v59 = vld [vmem:[%s1126_s1 + $0xd8] sm:$0xff]  ;;  %v704_v62 = vpack.c.bf16 %v39_v54, %v38_v53 }
   0xf   :  { %729 = vmatpush3.bf16.msra.mxu1 %v728_v38  ;;  %699 = vmatprep.subr.bf16.mxu0 %v698_v39  ;;  %v88_v60 = vld [vmem:[%s1126_s1 + $0x1d0] sm:$0xff]  ;;  %v89_v61 = vld [vmem:[%s1126_s1 + $0x1d8] sm:$0xff]  ;;  %v736_v63 = vpack.c.bf16 %v71_v57, %v70_v55  ;;  %v706_v0 = vpack.c.bf16 %v57_v59, %v56_v58  ;;  %v58_v6 = vld [vmem:[%s1126_s1 + $0xe0] sm:$0xff]  ;;  %v779_v39 = vmov 0.0|0.0  }
  0x10   :  { %731 = vmatprep.subr.bf16.mxu1 %v730_v43  ;;  %v40_v1 = vld [vmem:[%s1126_s1 + $0x50] sm:$0xff]  ;;  %v41_v2 = vld [vmem:[%s1126_s1 + $0x58] sm:$0xff]  ;;  %v738_v4 = vpack.c.bf16 %v89_v61, %v88_v60  ;;  %v59_v7 = vld [vmem:[%s1126_s1 + $0xe8] sm:$0xff]  ;;  %v781_v43 = vmov 0.0  }
  0x11   :  { %v72_v3 = vld [vmem:[%s1126_s1 + $0x150] sm:$0xff]  ;;  %v73_v5 = vld [vmem:[%s1126_s1 + $0x158] sm:$0xff]  ;;  %v90_v8 = vld [vmem:[%s1126_s1 + $0x1e0] sm:$0xff]  ;;  %v708_v10 = vpack.c.bf16 %v41_v2, %v40_v1  ;;  %v710_v14 = vpack.c.bf16 %v59_v7, %v58_v6 }
  0x12   :  { %701 = vmatpush3.bf16.msra.mxu0 %v700_v50  ;;  %v91_v9 = vld [vmem:[%s1126_s1 + $0x1e8] sm:$0xff]  ;;  %v42_v11 = vld [vmem:[%s1126_s1 + $0x60] sm:$0xff]  ;;  %v740_v13 = vpack.c.bf16 %v73_v5, %v72_v3  ;;  %v995_v17 = vld [vmem:[%s1127_s0 + $0x18] sm:$0xff] }
  0x13   :  { %733 = vmatpush3.bf16.msra.mxu1 %v732_v51  ;;  %703 = vmatprep.subr.bf16.mxu0 %v702_v52  ;;  %v43_v12 = vld [vmem:[%s1126_s1 + $0x68] sm:$0xff]  ;;  %v74_v15 = vld [vmem:[%s1126_s1 + $0x160] sm:$0xff]  ;;  %v742_v18 = vpack.c.bf16 %v91_v9, %v90_v8  ;;  %v60_v20 = vld [vmem:[%s1126_s1 + $0xf0] sm:$0xff] }
  0x14   :  { %735 = vmatprep.subr.bf16.mxu1 %v734_v56  ;;  %v990_v16 = vld [vmem:[%s1127_s0 + $0x8] sm:$0xff]  ;;  %v61_v21 = vld [vmem:[%s1126_s1 + $0xf8] sm:$0xff]  ;;  %v92_v22 = vld [vmem:[%s1126_s1 + $0x1f0] sm:$0xff]  ;;  %228 = vmatprep.mubr.f32.mxu1 %v995_v17  ;;  %v712_v24 = vpack.c.bf16 %v43_v12, %v42_v11 }
  0x15   :  { %v75_v19 = vld [vmem:[%s1126_s1 + $0x168] sm:$0xff]  ;;  %158 = vmatprep.mubr.f32.mxu0 %v990_v16  ;;  %v93_v23 = vld [vmem:[%s1126_s1 + $0x1f8] sm:$0xff]  ;;  %v714_v26 = vpack.c.bf16 %v61_v21, %v60_v20  ;;  %v44_v27 = vld [vmem:[%s1126_s1 + $0x70] sm:$0xff] }
  0x16   :  { %705 = vmatpush3.bf16.msra.mxu0 %v704_v62  ;;  %v744_v25 = vpack.c.bf16 %v75_v19, %v74_v15  ;;  %v45_v28 = vld [vmem:[%s1126_s1 + $0x78] sm:$0xff]  ;;  %v746_v29 = vpack.c.bf16 %v93_v23, %v92_v22  ;;  %v76_v30 = vld [vmem:[%s1126_s1 + $0x170] sm:$0xff]  ;;  %v234_v34 = vld [vmem:[%s1128_s2] sm:$0xff] }
  0x17   :  { %737 = vmatpush3.bf16.msra.mxu1 %v736_v63  ;;  %707 = vmatprep.subr.bf16.mxu0 %v706_v0  ;;  %v77_v31 = vld [vmem:[%s1126_s1 + $0x178] sm:$0xff]  ;;  %v716_v32 = vpack.c.bf16 %v45_v28, %v44_v27  ;;  %v235_v35 = vld [vmem:[%s1128_s2 + $0x8] sm:$0xff]  ;;  %v1035_v36 = vld [vmem:[%s1127_s0] sm:$0xff] }
  0x18   :  { %739 = vmatprep.subr.bf16.mxu1 %v738_v4  ;;  %v748_v33 = vpack.c.bf16 %v77_v31, %v76_v30  ;;  %v751_v37 = vpack.c.bf16 %v235_v35, %v234_v34  ;;  %v1040_v38 = vld [vmem:[%s1127_s0 + $0x10] sm:$0xff]  ;;  %v237_v41 = vld [vmem:[%s1128_s2 + $0x18] sm:$0xff]  ;;  %v320_v51 = vld [vmem:[%s1129_s4] sm:$0x3] }
  0x19   :  { %v236_v40 = vld [vmem:[%s1128_s2 + $0x10] sm:$0xff]  ;;  %v585_v52 = vld [vmem:[%s1130_s3] ss:$0 sm:$0xff]  ;;  %v413_v57 = vld [vmem:[%s1131_s6 + $0x8] sm:$0xff] }
  0x1a   :  { %709 = vmatpush3.bf16.msra.mxu0 %v708_v10  ;;  %v754_v42 = vpack.c.bf16 %v237_v41, %v236_v40  ;;  %v417_v58 = vld [vmem:[%s1131_s6 + $0x28] sm:$0xff]  ;;  %v415_v59 = vld [vmem:[%s1131_s6 + $0x18] sm:$0xff]  ;;  %v412_v62 = vld [vmem:[%s1131_s6] sm:$0xff] }
  0x1b   :  { %741 = vmatpush3.bf16.msra.mxu1 %v740_v13  ;;  %711 = vmatprep.subr.bf16.mxu0 %v710_v14  ;;  %v756_v60 = vpack.c.bf16 %v417_v58, %v413_v57  ;;  %v419_v61 = vld [vmem:[%s1131_s6 + $0x38] sm:$0xff]  ;;  %v416_v63 = vld [vmem:[%s1131_s6 + $0x20] sm:$0xff]  ;;  %v414_v2 = vld [vmem:[%s1131_s6 + $0x10] sm:$0xff] }
  0x1c   :  { %743 = vmatprep.subr.bf16.mxu1 %v742_v18  ;;  %v764_v0 = vpack.c.bf16 %v419_v61, %v415_v59  ;;  %v758_v1 = vpack.c.bf16 %v416_v63, %v412_v62  ;;  %v418_v3 = vld [vmem:[%s1131_s6 + $0x30] sm:$0xff]  ;;  %v421_v4 = vld [vmem:[%s1131_s6 + $0x48] sm:$0xff]  ;;  %v423_v7 = vld [vmem:[%s1131_s6 + $0x58] sm:$0xff] }
  0x1d   :  { %v766_v5 = vpack.c.bf16 %v418_v3, %v414_v2  ;;  %v425_v6 = vld [vmem:[%s1131_s6 + $0x68] sm:$0xff]  ;;  %v427_v8 = vld [vmem:[%s1131_s6 + $0x78] sm:$0xff]  ;;  %v420_v11 = vld [vmem:[%s1131_s6 + $0x40] sm:$0xff] }
  0x1e   :  { %713 = vmatpush3.bf16.msra.mxu0 %v712_v24  ;;  %v760_v9 = vpack.c.bf16 %v425_v6, %v421_v4  ;;  %v768_v10 = vpack.c.bf16 %v427_v8, %v423_v7  ;;  %v424_v12 = vld [vmem:[%s1131_s6 + $0x60] sm:$0xff]  ;;  %v422_v13 = vld [vmem:[%s1131_s6 + $0x50] sm:$0xff] }
  0x1f   :  { %745 = vmatpush3.bf16.msra.mxu1 %v744_v25  ;;  %715 = vmatprep.subr.bf16.mxu0 %v714_v26  ;;  %v762_v14 = vpack.c.bf16 %v424_v12, %v420_v11  ;;  %v426_v15 = vld [vmem:[%s1131_s6 + $0x70] sm:$0xff]  ;;  %v587_v19 = vld [vmem:[%s1132_s5] ss:$0 sm:$0xff] }
  0x20   :  { %747 = vmatprep.subr.bf16.mxu1 %v746_v29  ;;  %v770_v18 = vpack.c.bf16 %v426_v15, %v422_v13 }
  0x22   :  { %717 = vmatpush3.bf16.msra.mxu0 %v716_v32 }
  0x23   :  { %749 = vmatpush3.bf16.msra.mxu1 %v748_v33  ;;  %750 = vmatprep.subr.bf16.mxu0 %v779_v39 }
  0x24   :  { %681 = vmatprep.subr.mxu1 %v781_v43 }
  0x25   :  { %159 = vmatmul.mubr.f32.vlgmr.msra.gmra.mrb[0].mxu0 %v1035_v36 }
  0x26   :  { %229 = vmatmul.mubr.f32.vlgmr.msra.gmra.mrb[0].mxu1 %v1040_v38  ;;  %752 = vmatpush3.bf16.msra.mxu0 %v751_v37 }
  0x27   :  { %753 = vmatprep.subr.bf16.mxu0 %v779_v39  ;;  %678 = vmatprep.mubr.msk.f32.mxu0 %vm780_vm0, %v781_v43 }
  0x28   :  { %683 = vmatprep.mubr.msk.f32.mxu1 %vm780_vm0, %v781_v43  ;;  %682 = vmatpush3.msk.msra.mxu1 %vm332_vm2, %v320_v51 }
  0x29   :  { %757 = vmatprep.subr.bf16.mxu1 %v756_v60 }
  0x2a   :  { %755 = vmatpush3.bf16.msra.mxu0 %v754_v42 }
  0x2b   :  { %765 = vmatprep.subr.bf16.mxu0 %v764_v0 }
  0xf8   :  { %v625_v44 = vpop.f32.mrb[0].mxu0 }
  0xf9   :  { %v660_v45 = vpop.f32.mrb[0].mxu1  ;;  %v626_v46 = vpop.f32.mrb[1].mxu0 }
  0xfa   :  { %v627_v47 = vadd.f32 %v626_v46, %v625_v44  ;;  %v661_v48 = vpop.f32.mrb[1].mxu1 }
  0xfb   :  { %v662_v49 = vadd.f32 %v661_v48, %v660_v45 }
  0xfd   :  { %v231_v50 = vadd.f32 %v662_v49, %v627_v47 }
  0xff   :  { %679 = vmatmul.mubr.msk.f32.vlgmr.msra.gmra.mrb[2].mxu0 %vm245_vm1, %v231_v50 }
 0x100   :  { %566 = vmatprep.mubr.f32.mxu0 %v781_v43  ;;  %767 = vmatpush1.bf16.msra.mxu0 %v766_v5 }
 0x101   :  { %769 = vmatprep.subr.bf16.mxu0 %v768_v10 }
 0x104   :  { %771 = vmatpush1.bf16.msra.mxu0 %v770_v18 }
 0x1d2   :  { %v315_v53 = vpop.f32.mrb[2].mxu0 }
 0x1d3   :  { %v316_v54 = vadd.f32 %v585_v52, %v315_v53  ;;  %v680_v55 = vpop.f32.mrb[3].mxu0 }
 0x1d5   :  { %v319_v56 = vmax.f32 %v316_v54, 0.0 }
 0x1d7   :  { %684 = vmatmul.mubr.msk.f32.vlgmr.msra.gmra.mrb[2].mxu1 %vm328_vm3, %v319_v56 }
 0x1d8   :  { %495 = vmatprep.mubr.f32.mxu1 %v781_v43  ;;  %759 = vmatpush1.bf16.msra.mxu1 %v758_v1 }
 0x1d9   :  { %761 = vmatprep.subr.bf16.mxu1 %v760_v9 }
 0x1dc   :  { %763 = vmatpush1.bf16.msra.mxu1 %v762_v14 }
 0x2aa   :  { %v402_v20 = vpop.f32.mrb[2].mxu1 }
 0x2ab   :  { %v403_v21 = vadd.f32 %v587_v19, %v402_v20  ;;  %v685_v22 = vpop.f32.mrb[3].mxu1 }
 0x2ad   :  { %v590_v23 = vmul.f32 -1.442695, %v403_v21 }
 0x2af   :  { %775 = vpow2.f32 %v590_v23 }
 0x2b9   :  { %v776_v24 = vpop.eup %775 }
 0x2ba   :  { %v409_v25 = vadd.f32 1.0, %v776_v24 }
 0x2bc   :  { %777 = vrcp.f32 %v409_v25 }
 0x2c6   :  { %v778_v26 = vpop.eup %777 }
 0x2c7   :  { %591 = vmatmul.mubr.msk.f32.vlgmr.msra.gmra.mrb[4].mxu1 %vm245_vm1, %v778_v26  ;;  %592 = vmatmul.mubr.msk.f32.vlgmr.msra.gmra.mrb[4].mxu0 %vm245_vm1, %v778_v26 }
 0x39a   :  { %v497_v27 = vpop.f32.mrb[4].mxu1  ;;  %v568_v28 = vpop.f32.mrb[4].mxu0 }
 0x39b   :  { %v573_v29 = vmul.f32 %v497_v27, %v1035_v36  ;;  %v575_v30 = vmul.f32 %v568_v28, %v1040_v38  ;;  %v499_v31 = vpop.f32.mrb[5].mxu1  ;;  %v570_v32 = vpop.f32.mrb[5].mxu0 }
 0x39c   :  { %v574_v33 = vmul.f32 %v499_v31, %v990_v16  ;;  %v576_v34 = vmul.f32 %v570_v32, %v995_v17 }
 0x39d   :  { %577 = vst [vmem:[%s1133_s7] sm:$0xff] %v573_v29  ;;  %579 = vst [vmem:[%s1133_s7 + $0x10] sm:$0xff] %v575_v30 }
 0x39e   :  { %578 = vst [vmem:[%s1133_s7 + $0x8] sm:$0xff] %v574_v33  ;;  %580 = vst [vmem:[%s1133_s7 + $0x18] sm:$0xff] %v576_v34 }

</bundles_post_ra>
